<compile_context>
chip_gen: v6e
topology: v6e:2x2x1
jax: 0.10.0
libtpu: 0.0.40
codegen_flags: <defaults>
</compile_context>

<pallas_src>
import jax
import jax.numpy as jnp
import numpy as np
from jax.experimental import pallas as pl
from jax.experimental.pallas import tpu as pltpu

_LANE = 128      # lane width: pad the label dim to a multiple of this
_SUBLANE = 8     # sublane granularity for the batch tile


def _round_up(x, m):
    return ((x + m - 1) // m) * m


def _pick_batch_tile(B, block_b):
    # Target >= 2 grid steps when B is large (v7x has 2 TCs; "parallel"
    # shards batch tiles across them); clamp to block_b; keep multiple of 8.
    bm = _round_up(max(1, pl.cdiv(B, 2)), _SUBLANE)
    return max(_SUBLANE, min(block_b, bm))


# --------------------------------------------------------------------------
# Kernels
# --------------------------------------------------------------------------
def _head_kernel(x_ref, w_ref, b_ref, o_ref):
    # x_ref: [bm, H] f32   w_ref: [H, Np] bf16   b_ref: [1, Np] f32
    # o_ref: [bm, Np] f32
    x_bf = x_ref[...].astype(jnp.bfloat16)               # in-kernel cast (VPU)
    acc = jnp.dot(x_bf, w_ref[...], preferred_element_type=jnp.float32)
    o_ref[...] = (acc + b_ref[...]).astype(o_ref.dtype)  # bias add stays f32


def _fused_pooler_head_kernel(x_ref, wp_ref, bp_ref, wc_ref, bc_ref, o_ref):
    # x_ref : [bm, H] f32 CLS hidden state
    # wp_ref: [H, H]  bf16, bp_ref: [1, H]  f32  (BERT pooler dense)
    # wc_ref: [H, Np] bf16, bc_ref: [1, Np] f32  (classification head)
    # o_ref : [bm, Np] f32
    x_bf = x_ref[...].astype(jnp.bfloat16)
    pooled = jnp.tanh(                                    # tanh -> EUP slot
        jnp.dot(x_bf, wp_ref[...], preferred_element_type=jnp.float32)
        + bp_ref[...]
    )
    acc = jnp.dot(pooled.astype(jnp.bfloat16), wc_ref[...],
                  preferred_element_type=jnp.float32)
    o_ref[...] = (acc + bc_ref[...]).astype(o_ref.dtype)


# --------------------------------------------------------------------------
# One-time parameter preparation (hoisted out of the per-call path)
# --------------------------------------------------------------------------
def prepare_head_params(weight_t, bias):
    """weight_t: [H, N] f32 (transpose of PyTorch [N, H]); bias: [N] f32.
    Returns lane-dense, pre-cast params: ([H, Np] bf16, [1, Np] f32)."""
    H, N = weight_t.shape
    n_pad = (-N) % _LANE
    Np = N + n_pad
    w_bf = jnp.pad(weight_t, ((0, 0), (0, n_pad))).astype(jnp.bfloat16)
    b2d = jnp.pad(bias, (0, n_pad)).reshape(1, Np).astype(jnp.float32)
    return w_bf, b2d


def prepare_pooler_params(pooler_weight_t, pooler_bias):
    """pooler_weight_t: [H, H] f32 (transposed); pooler_bias: [H] f32."""
    H = pooler_weight_t.shape[0]
    return (pooler_weight_t.astype(jnp.bfloat16),
            pooler_bias.reshape(1, H).astype(jnp.float32))


# --------------------------------------------------------------------------
# Forward wrappers
# --------------------------------------------------------------------------
def sentiment_head_forward(pooler_output, w_prep, b_prep, num_labels, *,
                           block_b=512):
    """nn.Linear(hidden_size, num_labels) on prepared params.

    pooler_output: [B, H] f32, w_prep: [H, Np] bf16, b_prep: [1, Np] f32.
    Returns [B, num_labels] f32 logits."""
    B, H = pooler_output.shape
    Np = w_prep.shape[1]
    bm = _pick_batch_tile(B, block_b)
    grid = (pl.cdiv(B, bm),)

    cost = pl.CostEstimate(
        flops=2 * B * H * Np,
        transcendentals=0,
        bytes_accessed=B * H * 4 + H * Np * 2 + Np * 4 + B * Np * 4,
    )

    out = pl.pallas_call(
        _head_kernel,
        out_shape=jax.ShapeDtypeStruct((B, Np), jnp.float32),
        grid_spec=pl.GridSpec(
            grid=grid,
            in_specs=[
                pl.BlockSpec((bm, H), lambda i: (i, 0)),   # activation tile (f32)
                # TODO(synk): pl.Buffered(1) would single-buffer the resident
                # weight (helps v7x VMEM headroom); trivial at these shapes.
                pl.BlockSpec((H, Np), lambda i: (0, 0)),   # full weight, resident
                pl.BlockSpec((1, Np), lambda i: (0, 0)),   # bias, resident
            ],
            out_specs=pl.BlockSpec((bm, Np), lambda i: (i, 0)),
        ),
        compiler_params=pltpu.CompilerParams(
            dimension_semantics=("parallel",),
        ),
        cost_estimate=cost,
    )(pooler_output.astype(jnp.float32), w_prep, b_prep)

    return out[:, :num_labels]


def fused_pooler_head_forward(cls_hidden, wp_prep, bp_prep, wc_prep, bc_prep,
                              num_labels, *, block_b=512):
    """Fused BERT pooler (dense + tanh) + classification head.

    cls_hidden: [B, H] f32 CLS-token hidden state (pre-pooler).
    Returns [B, num_labels] f32 logits."""
    B, H = cls_hidden.shape
    Np = wc_prep.shape[1]
    bm = _pick_batch_tile(B, block_b)
    grid = (pl.cdiv(B, bm),)

    cost = pl.CostEstimate(
        flops=2 * B * H * H + 2 * B * H * Np,
        transcendentals=B * H,
        bytes_accessed=(B * H * 4 + H * H * 2 + H * 4
                        + H * Np * 2 + Np * 4 + B * Np * 4),
    )

    out = pl.pallas_call(
        _fused_pooler_head_kernel,
        out_shape=jax.ShapeDtypeStruct((B, Np), jnp.float32),
        grid_spec=pl.GridSpec(
            grid=grid,
            in_specs=[
                pl.BlockSpec((bm, H), lambda i: (i, 0)),   # CLS hidden tile (f32)
                pl.BlockSpec((H, H), lambda i: (0, 0)),    # pooler weight, resident
                pl.BlockSpec((1, H), lambda i: (0, 0)),    # pooler bias, resident
                pl.BlockSpec((H, Np), lambda i: (0, 0)),   # head weight, resident
                pl.BlockSpec((1, Np), lambda i: (0, 0)),   # head bias, resident
            ],
            out_specs=pl.BlockSpec((bm, Np), lambda i: (i, 0)),
        ),
        compiler_params=pltpu.CompilerParams(
            dimension_semantics=("parallel",),
        ),
        cost_estimate=cost,
    )(cls_hidden.astype(jnp.float32), wp_prep, bp_prep, wc_prep, bc_prep)

    return out[:, :num_labels]


# --------------------------------------------------------------------------
# Init helpers / self-test
# --------------------------------------------------------------------------
def _init_linear_params(key, fan_in, fan_out):
    """Deterministic init matching nn.Linear default (uniform +-1/sqrt(fan_in)).
    Returns transposed weight [fan_in, fan_out] and bias [fan_out]."""
    kw, kb = jax.random.split(key)
    bound = 1.0 / np.sqrt(fan_in)
    w = jax.random.uniform(kw, (fan_out, fan_in), jnp.float32,
                           minval=-bound, maxval=bound)
    b = jax.random.uniform(kb, (fan_out,), jnp.float32,
                           minval=-bound, maxval=bound)
    return jnp.transpose(w), b  # [fan_in, fan_out], [fan_out]


if __name__ == "__main__":
    # Small shapes consistent with the module: batch=8, hidden=128, labels=5.
    B, H, N = 8, 128, 5
    key = jax.random.PRNGKey(0)
    k_x, k_p, k_pool = jax.random.split(key, 3)

    pooler_output = jax.random.normal(k_x, (B, H), jnp.float32)
    weight_t, bias = _init_linear_params(k_p, H, N)

    # One-time parameter prep (pad + bf16 cast hoisted out of forward).
    w_prep, b_prep = prepare_head_params(weight_t, bias)
    w_r = weight_t.astype(jnp.bfloat16).astype(jnp.float32)

    # ---- 1. standalone head (the module's own proj) ------------------------
    logits = jax.block_until_ready(
        sentiment_head_forward(pooler_output, w_prep, b_prep, N))
    x_r = pooler_output.astype(jnp.bfloat16).astype(jnp.float32)
    ref = x_r @ w_r + bias
    np.testing.assert_allclose(np.asarray(logits), np.asarray(ref),
                               rtol=1e-4, atol=1e-4)

    # ---- 2. ragged batch (exercises cdiv grid / clipped last block) --------
    B2 = 11
    x2 = jax.random.normal(jax.random.fold_in(k_x, 2), (B2, H), jnp.float32)
    logits2 = jax.block_until_ready(
        sentiment_head_forward(x2, w_prep, b_prep, N))
    ref2 = x2.astype(jnp.bfloat16).astype(jnp.float32) @ w_r + bias
    np.testing.assert_allclose(np.asarray(logits2), np.asarray(ref2),
                               rtol=1e-4, atol=1e-4)

    # ---- 3. fused pooler(dense+tanh) + head (recommended path) -------------
    cls_hidden = jax.random.normal(jax.random.fold_in(k_x, 1), (B, H),
                                   jnp.float32)
    wp_t, bp = _init_linear_params(k_pool, H, H)
    wp_prep, bp_prep = prepare_pooler_params(wp_t, bp)
    fused = jax.block_until_ready(
        fused_pooler_head_forward(cls_hidden, wp_prep, bp_prep,
                                  w_prep, b_prep, N))
    cls_r = cls_hidden.astype(jnp.bfloat16).astype(jnp.float32)
    wp_r = wp_t.astype(jnp.bfloat16).astype(jnp.float32)
    pooled_r = jnp.tanh(cls_r @ wp_r + bp)
    pooled_r = pooled_r.astype(jnp.bfloat16).astype(jnp.float32)
    fused_ref = pooled_r @ w_r + bias
    np.testing.assert_allclose(np.asarray(fused), np.asarray(fused_ref),
                               rtol=3e-2, atol=3e-2)

    print("KERNEL_OK")
</pallas_src>

<mosaic_0001>
module attributes {stable_mosaic.version = 11 : i64} {
  func.func @_head_kernel(%arg0: i32, %arg1: memref<8x128xf32, #tpu.memory_space<vmem>>, %arg2: memref<128x128xbf16, #tpu.memory_space<vmem>>, %arg3: memref<1x128xf32, #tpu.memory_space<vmem>>, %arg4: memref<8x128xf32, #tpu.memory_space<vmem>>) attributes {dimension_semantics = [#tpu.dimension_semantics<parallel>], iteration_bounds = array<i64: 1>, scalar_prefetch = 0 : i64, scratch_operands = 0 : i64, tpu.core_type = #tpu.core_type<tc>, window_params = [{transform_indices = @transform_0, window_bounds = array<i64: 8, 128>}, {pipeline_mode = #tpu.pipeline_mode<synchronous>, transform_indices = @transform_1, window_bounds = array<i64: 128, 128>}, {pipeline_mode = #tpu.pipeline_mode<synchronous>, transform_indices = @transform_2, window_bounds = array<i64: 1, 128>}, {transform_indices = @transform_3, window_bounds = array<i64: 8, 128>}]} {
    %c0 = arith.constant 0 : index
    %c0_0 = arith.constant 0 : index
    %0 = vector.load %arg1[%c0, %c0_0] : memref<8x128xf32, #tpu.memory_space<vmem>>, vector<8x128xf32>
    %1 = arith.truncf %0 : vector<8x128xf32> to vector<8x128xbf16>
    %c0_1 = arith.constant 0 : index
    %c0_2 = arith.constant 0 : index
    %2 = vector.load %arg2[%c0_1, %c0_2] : memref<128x128xbf16, #tpu.memory_space<vmem>>, vector<128x128xbf16>
    %cst = arith.constant dense<0.000000e+00> : vector<8x128xf32>
    %3 = tpu.matmul %1, %2, %cst {dimension_numbers = #tpu.dot_dimension_numbers<[1], [0], [0], [1], [0, 0, 1, 1], [], []>} : vector<8x128xbf16>, vector<128x128xbf16>, vector<8x128xf32> -> vector<8x128xf32>
    %c0_3 = arith.constant 0 : index
    %c0_4 = arith.constant 0 : index
    %4 = vector.load %arg3[%c0_3, %c0_4] : memref<1x128xf32, #tpu.memory_space<vmem>>, vector<1x128xf32>
    %5 = vector.broadcast %4 : vector<1x128xf32> to vector<8x128xf32>
    %6 = arith.addf %3, %5 : vector<8x128xf32>
    %c0_5 = arith.constant 0 : index
    %c0_6 = arith.constant 0 : index
    %7 = vector.load %arg4[%c0_5, %c0_6] : memref<8x128xf32, #tpu.memory_space<vmem>>, vector<8x128xf32>
    tpu.vector_store %arg4[%c0_5, %c0_6], %6 {strides = array<i32>} : memref<8x128xf32, #tpu.memory_space<vmem>>, vector<8x128xf32>,
    return
  }
  func.func @transform_0(%arg0: i32) -> (i32, i32) {
    %c0_i32 = arith.constant 0 : i32
    %c0_i32_0 = arith.constant 0 : i32
    return %arg0, %c0_i32 : i32, i32
  }
  func.func @transform_1(%arg0: i32) -> (i32, i32) {
    %c0_i32 = arith.constant 0 : i32
    %c0_i32_0 = arith.constant 0 : i32
    %c0_i32_1 = arith.constant 0 : i32
    return %c0_i32, %c0_i32_0 : i32, i32
  }
  func.func @transform_2(%arg0: i32) -> (i32, i32) {
    %c0_i32 = arith.constant 0 : i32
    %c0_i32_0 = arith.constant 0 : i32
    %c0_i32_1 = arith.constant 0 : i32
    return %c0_i32, %c0_i32_0 : i32, i32
  }
  func.func @transform_3(%arg0: i32) -> (i32, i32) {
    %c0_i32 = arith.constant 0 : i32
    %c0_i32_0 = arith.constant 0 : i32
    return %arg0, %c0_i32 : i32, i32
  }
}

</mosaic_0001>

<bundles_post_ra>
// kernel: tpu_custom_call.1
= control target key start
LH: loop header
LB: loop body
LE: loop exit
PB: predicated region body
PF: predicated region fallthrough
CT: control target
= control target key end

     0   :  { %8 = vsyncpa [#allocation3], 0  ;;  %s330_s0 = inlined_call_operand.hbm [shape: f32[8,128], index: 0, kind: input, shape index: {}]   ;;  %s331_s1 = inlined_call_operand.hbm [shape: bf16[128,128], index: 1, kind: input, shape index: {}]   ;;  %s332_s2 = inlined_call_operand.vmem [shape: f32[1,128], index: 2, kind: input, shape index: {}]   ;;  %s333_s3 = inlined_call_operand.hbm [shape: f32[8,128], index: 3, kind: output, shape index: {}]  }
   0x1   :  { %9 = vsyncpa [#allocation6], 0 }
   0x2   :  { %10 = vsyncpa [#allocation4], 0  ;;  %s291_s12 = smov [#allocation2]   ;;  %s292_s14 = smov [#allocation5]  }
   0x3   :  { %s17_s13 = sshll.u32 %s291_s12, 4  ;;  %s26_s15 = sshll.u32 %s292_s14, 4  ;;  %s18_s13 = int_to_ptr.vmem [resolvable:$true] %s17_s13  ;;  %s27_s15 = int_to_ptr.vmem [resolvable:$true] %s26_s15 }
   0x4   :  { %s233_s16 = scalar_lea.vmem %s18_s13, 128  ;;  %p238_p1 = scmp.lt.s32.totalorder %s18_s13, %s18_s13 }
   0x5   :  { %p234_p0 = scmp.ne.s32.totalorder %s18_s13, %s233_s16  ;;  %p239_p2 = scmp.lt.s32.totalorder %s233_s16, %s233_s16 }
   0x7   :  { %p240_p3 = por %p239_p2, %p238_p1 }
   0x9   :  { %p241_p4 = pnand %p240_p3, %p234_p0 }
   0xb   :  { %244 = shalt.err (!%p241_p4)
}
   0xc   :  { %20 = dma.hbm_to_vmem [thread:$0]  %s330_s0, 128, %s18_s13, [#allocation3]  }
   0xd   :  { %s253_s19 = scalar_lea.vmem %s27_s15, 1024  ;;  %p258_p6 = scmp.lt.s32.totalorder %s27_s15, %s27_s15 }
   0xe   :  { %p254_p5 = scmp.ne.s32.totalorder %s27_s15, %s253_s19  ;;  %p259_p7 = scmp.lt.s32.totalorder %s253_s19, %s253_s19 }
  0x10   :  { %p260_p8 = por %p259_p7, %p258_p6 }
  0x12   :  { %p261_p9 = pnand %p260_p8, %p254_p5 }
  0x14   :  { %264 = shalt.err (!%p261_p9)
}
  0x15   :  { %s293_s20 = smov 64   ;;  %s294_s21 = smov 4  }
  0x16   :  { %32 = dma.hbm_to_vmem [thread:$0]  %s331_s1, 1024, %s27_s15, [#allocation6], %s293_s20, %s293_s20, %s294_s21  }
  0x17   :  { %285 = dma.done.wait [#allocation3], 128  }
  0x18   :  { %286 = vsyncadd [#allocation3], 4294967168 }
  0x19   :  { %287 = dma.done.wait [#allocation6], 1024  }
  0x1a   :  { %288 = vsyncadd [#allocation6], 4294966272  ;;  %v295_v0 = vmov 0.0   ;;  %vm296_vm0 = vmmov 0   ;;  %v217_v1 = vld [vmem:[#allocation5 + $0x38] sm:$0xff]   ;;  %v218_v2 = vld [vmem:[#allocation5 + $0x30] sm:$0xff]  }
  0x1b   :  { %190 = vmatprep.subr.bf16.mxu0 %v295_v0  ;;  %206 = vmatprep.mubr.msk.bf16.mxu0 %vm296_vm0, %v295_v0  ;;  %v219_v3 = vld [vmem:[#allocation5 + $0x28] sm:$0xff]   ;;  %v220_v4 = vld [vmem:[#allocation5 + $0x20] sm:$0xff]   ;;  %v221_v5 = vld [vmem:[#allocation5 + $0x18] sm:$0xff]   ;;  %s297_s24 = smov [#allocation7]  }
  0x1c   :  { %191 = vmatpush3.bf16.msra.mxu0 %v217_v1  ;;  %v222_v6 = vld [vmem:[#allocation5 + $0x10] sm:$0xff]   ;;  %v223_v7 = vld [vmem:[#allocation5 + $0x8] sm:$0xff]   ;;  %v224_v8 = vld [vmem:[#allocation5] sm:$0xff]   ;;  %s162_s25 = sshll.u32 %s297_s24, 4  ;;  %s163_s25 = int_to_ptr.vmem [resolvable:$true] %s162_s25 }
  0x1d   :  { %192 = vmatprep.subr.bf16.mxu0 %v295_v0  ;;  %v42_v9 = vld [vmem:[#allocation2] sm:$0xff]  ;;  %s265_s26 = scalar_lea.vmem %s163_s25, 128  ;;  %p270_p11 = scmp.lt.s32.totalorder %s163_s25, %s163_s25 }
  0x1e   :  { %v43_v10 = vpack.c.bf16 %v42_v9, %v42_v9  ;;  %v172_v11 = vld [vmem:[%s332_s2] ss:$0 sm:$0xff]  ;;  %p266_p10 = scmp.ne.s32.totalorder %s163_s25, %s265_s26  ;;  %p271_p12 = scmp.lt.s32.totalorder %s265_s26, %s265_s26 }
  0x20   :  { %193 = vmatpush3.bf16.msra.mxu0 %v218_v2  ;;  %p272_p13 = por %p271_p12, %p270_p11 }
  0x21   :  { %194 = vmatprep.subr.bf16.mxu0 %v295_v0 }
  0x22   :  { %p273_p0 = pnand %p272_p13, %p266_p10 }
  0x24   :  { %195 = vmatpush3.bf16.msra.mxu0 %v219_v3 }
  0x25   :  { %196 = vmatprep.subr.bf16.mxu0 %v295_v0 }
  0x28   :  { %197 = vmatpush3.bf16.msra.mxu0 %v220_v4 }
  0x29   :  { %198 = vmatprep.subr.bf16.mxu0 %v295_v0 }
  0x2c   :  { %199 = vmatpush3.bf16.msra.mxu0 %v221_v5 }
  0x2d   :  { %200 = vmatprep.subr.bf16.mxu0 %v295_v0 }
  0x30   :  { %201 = vmatpush3.bf16.msra.mxu0 %v222_v6 }
  0x31   :  { %202 = vmatprep.subr.bf16.mxu0 %v295_v0 }
  0x34   :  { %203 = vmatpush3.bf16.msra.mxu0 %v223_v7 }
  0x35   :  { %204 = vmatprep.subr.bf16.mxu0 %v295_v0 }
  0x38   :  { %205 = vmatpush3.bf16.msra.mxu0 %v224_v8 }
  0x3b   :  { %207 = vmatmul.mubr.bf16.vlgmr.msra.gmra.mxu0 %v43_v10 }
  0xfb   :  { %v149_v12 = vpop.f32.mrf.mxu0 }
  0xfc   :  { %v150_v13 = vadd.f32 %v172_v11, %v149_v12 }
  0xfd   :  { %v208_v14 = vpop.f32.mrf.mxu0 }
  0xfe   :  { %155 = vst [vmem:[#allocation7] sm:$0xff] %v150_v13 }
  0xff   :  { %v152_v15 = vpop.f32.mrf.mxu0 }
 0x100   :  { %276 = shalt.err (!%p273_p0)
}
 0x101   :  { %165 = dma.vmem_to_hbm [thread:$0]  %s163_s25, 128, %s333_s3, [#allocation4]   ;;  %v209_v16 = vpop.f32.mrf.mxu0 }
 0x102   :  { %289 = dma.done.wait [#allocation4], 128  }
 0x103   :  { %290 = vsyncadd [#allocation4], 4294967168 }
 0x104   :  { %169 = vsyncpa [#allocation3], 1 }
 0x105   :  { %170 = vsyncpa [#allocation6], 1 }
 0x106   :  { %171 = vsyncpa [#allocation4], 1 }

</bundles_post_ra>
